<compile_context>
chip_gen: v5e
topology: v5e:2x2
jax: 0.10.0
libtpu: 0.0.40
codegen_flags: <defaults>
</compile_context>

<pallas_src>
import functools
from typing import Any, NamedTuple, Tuple

import jax
import jax.numpy as jnp
from jax.experimental import pallas as pl
from jax.experimental.pallas import tpu as pltpu

_LANE = 128
_PER_TC_VMEM_TARGET = 48 << 20   # stay well under v7x's 64 MiB per-TensorCore


def _round_up(n, m):
    return ((n + m - 1) // m) * m


# -----------------------------------------------------------------------------
# Fused-stack kernel.  refs = (x_ref, w0_ref, b0_ref, w1_ref, b1_ref, ..., o_ref)
# -----------------------------------------------------------------------------
def _stack_kernel(*refs, num_layers, compute_dtype, precision):
    x_ref = refs[0]
    o_ref = refs[-1]

    h = x_ref[...]
    for layer in range(num_layers):
        w_ref = refs[1 + 2 * layer]
        b_ref = refs[2 + 2 * layer]
        # MXU operands in compute_dtype (bf16 default), f32 accumulate.
        y = jnp.dot(h.astype(compute_dtype), w_ref[...],
                    preferred_element_type=jnp.float32,
                    precision=precision)
        # Bias-add + ReLU in f32 (cheap VPU epilogue); carry the inter-layer
        # activation in the compute dtype to halve its live footprint.
        h = jnp.maximum(y + b_ref[...], 0.0).astype(compute_dtype)
    o_ref[...] = h.astype(o_ref.dtype)


# -----------------------------------------------------------------------------
# One-time parameter packing (padding + cast hoisted out of the forward).
# -----------------------------------------------------------------------------
class PackedStackParams(NamedTuple):
    weights: Tuple[jax.Array, ...]   # each (d_in_pad, d_out_pad), compute dtype
    biases: Tuple[jax.Array, ...]    # each (1, d_out_pad), f32
    dims: Tuple[Tuple[int, int], ...]  # unpadded (d_in, d_out) per layer
    compute_dtype: Any


def pack_params(params, compute_dtype=jnp.bfloat16):
    """Pad + cast parameters ONCE so every forward reads them straight from HBM."""
    weights, biases, dims = [], [], []
    prev_pad = None
    for (w, b) in params:
        di, do = w.shape
        di_pad, do_pad = _round_up(di, _LANE), _round_up(do, _LANE)
        if prev_pad is not None:
            assert di_pad == prev_pad, "layer input width must match previous output"
        prev_pad = do_pad
        w_p = (jnp.zeros((di_pad, do_pad), compute_dtype)
               .at[:di, :do].set(w.astype(compute_dtype)))
        b_p = (jnp.zeros((1, do_pad), jnp.float32)
               .at[:, :do].set(jnp.asarray(b, jnp.float32).reshape(1, do)))
        weights.append(w_p)
        biases.append(b_p)
        dims.append((di, do))
    return PackedStackParams(tuple(weights), tuple(biases), tuple(dims),
                             compute_dtype)


def _vmem_budget_bytes(tm, x_dtype, out_dtype, packed, weight_buffers):
    """Per-TensorCore resident VMEM estimate for the fused design."""
    cd = jnp.dtype(packed.compute_dtype).itemsize
    w_bytes = sum(int(w.size) * cd + int(b.size) * 4
                  for w, b in zip(packed.weights, packed.biases)) * weight_buffers
    d_in_pad = packed.weights[0].shape[0]
    d_out_pad = packed.weights[-1].shape[1]
    max_width = max([d_in_pad] + [w.shape[1] for w in packed.weights])
    x_tiles = 2 * tm * d_in_pad * jnp.dtype(x_dtype).itemsize        # double-buffered
    out_tiles = 2 * tm * d_out_pad * jnp.dtype(out_dtype).itemsize   # double-buffered
    act = tm * max_width * (4 + cd)                                  # f32 y + cdtype h
    return w_bytes + x_tiles + out_tiles + act


# -----------------------------------------------------------------------------
# Forward pass.
# -----------------------------------------------------------------------------
def fully_connected_stack(x, packed: PackedStackParams, *, precision=None):
    """y = relu(...relu(relu(x @ W0 + b0) @ W1 + b1)... ) as one fused kernel."""
    B, d_in = x.shape
    out_dtype = x.dtype
    num_layers = len(packed.weights)
    d_out = packed.dims[-1][1]
    d_in_pad = packed.weights[0].shape[0]
    d_out_pad = packed.weights[-1].shape[1]
    assert packed.dims[0][0] == d_in, "input width mismatch"

    cd_size = jnp.dtype(packed.compute_dtype).itemsize
    x_size = jnp.dtype(x.dtype).itemsize

    # --- batch tiling --------------------------------------------------------
    # Packed 2-byte dtypes tile sublanes in 16s; use 16 when any 2-byte dtype
    # is in play to avoid partially-filled packed tiles.
    sublane = 16 if (cd_size == 2 or x_size == 2) else 8
    if B <= 128:
        tm = _round_up(B, sublane)
    else:
        # 256 fills the 256-wide MXU on v6e/v7x and halves grid-step overhead;
        # gate it on the per-TC VMEM budget (weights replicated per core).
        tm = 128
        for cand in (256, 128):
            if _vmem_budget_bytes(cand, x.dtype, out_dtype, packed,
                                  weight_buffers=1) <= _PER_TC_VMEM_TARGET:
                tm = cand
                break
    b_pad = _round_up(B, tm)

    # --- pad activations only when the shape actually requires it ------------
    if b_pad == B and d_in_pad == d_in:
        x_p = x
    else:
        x_p = jnp.zeros((b_pad, d_in_pad), x.dtype).at[:B, :d_in].set(x)

    def build(single_buffer_weights):
        in_specs = [pl.BlockSpec((tm, d_in_pad), lambda i: (i, 0))]
        flat = [x_p]
        for w_p, b_p in zip(packed.weights, packed.biases):
            di_pad, do_pad = w_p.shape
            if single_buffer_weights:
                # Grid-invariant blocks: double-buffering buys zero overlap but
                # doubles VMEM residency -> single-buffer them.
                w_spec = pl.BlockSpec((di_pad, do_pad), lambda i: (0, 0),
                                      pipeline_mode=pl.Buffered(1))
                b_spec = pl.BlockSpec((1, do_pad), lambda i: (0, 0),
                                      pipeline_mode=pl.Buffered(1))
            else:
                w_spec = pl.BlockSpec((di_pad, do_pad), lambda i: (0, 0))
                b_spec = pl.BlockSpec((1, do_pad), lambda i: (0, 0))
            in_specs += [w_spec, b_spec]
            flat += [w_p, b_p]

        wbuf = 1 if single_buffer_weights else 2
        budget = _vmem_budget_bytes(tm, x.dtype, out_dtype, packed, wbuf)
        # Leave headroom, never above v7x's per-TC safe ceiling.
        # TODO(synk): if budget ever exceeds this ceiling (very wide stacks),
        # split the stack into chunks of layers or tile N/K per layer instead
        # of keeping every weight resident.
        vmem_limit = int(min(max(budget + (8 << 20), 32 << 20), 56 << 20))

        flops = 2 * b_pad * sum(int(w.shape[0]) * int(w.shape[1])
                                for w in packed.weights)
        bytes_accessed = (int(x_p.size) * x_size
                          + sum(int(w.size) * cd_size + int(b.size) * 4
                                for w, b in zip(packed.weights, packed.biases))
                          + b_pad * d_out_pad * jnp.dtype(out_dtype).itemsize)

        kernel = functools.partial(_stack_kernel, num_layers=num_layers,
                                   compute_dtype=packed.compute_dtype,
                                   precision=precision)
        call = pl.pallas_call(
            kernel,
            out_shape=jax.ShapeDtypeStruct((b_pad, d_out_pad), out_dtype),
            grid_spec=pltpu.PrefetchScalarGridSpec(
                num_scalar_prefetch=0,
                grid=(b_pad // tm,),
                in_specs=in_specs,
                out_specs=pl.BlockSpec((tm, d_out_pad), lambda i: (i, 0)),
            ),
            compiler_params=pltpu.CompilerParams(
                dimension_semantics=("parallel",),
                vmem_limit_bytes=vmem_limit),
            cost_estimate=pl.CostEstimate(flops=flops, transcendentals=0,
                                          bytes_accessed=bytes_accessed),
        )
        return call, flat

    try:
        call, flat = build(single_buffer_weights=True)
        out_p = call(*flat)
    except Exception:
        # Fallback for JAX builds without pipeline_mode / Buffered support.
        call, flat = build(single_buffer_weights=False)
        out_p = call(*flat)

    return out_p[:B, :d_out]


# -----------------------------------------------------------------------------
# Init + reference.
# -----------------------------------------------------------------------------
def init_fully_connected_stack(key, d_in, ds_hid, d_out, dtype=jnp.float32):
    """Deterministic parameter init matching the module's layer shapes.

    Returns a list of (W, b) with W of shape (in_size, out_size), b (1, out_size).
    """
    sizes = [d_in] + list(ds_hid) + [d_out]
    params = []
    for i in range(len(sizes) - 1):
        key, kw, kb = jax.random.split(key, 3)
        in_size, out_size = sizes[i], sizes[i + 1]
        bound = 1.0 / jnp.sqrt(in_size)  # PyTorch Linear-style uniform bound
        w = jax.random.uniform(kw, (in_size, out_size), dtype, -bound, bound)
        b = jax.random.uniform(kb, (1, out_size), dtype, -bound, bound)
        params.append((w, b))
    return params


def _reference(x, params, precision=None):
    h = x
    for w, b in params:
        h = jnp.maximum(jnp.dot(h, w, precision=precision) + b, 0.0)
    return h


if __name__ == "__main__":
    # TODO(synk): dropout (p>0, training mode) not implemented; module default is p=0.
    key = jax.random.PRNGKey(0)
    k_x, k_p, k_x2 = jax.random.split(key, 3)

    d_in, ds_hid, d_out = 32, [64, 48], 24
    params = init_fully_connected_stack(k_p, d_in, ds_hid, d_out)

    # Pad + cast parameters ONCE (hoisted out of the forward).
    packed_bf16 = pack_params(params, compute_dtype=jnp.bfloat16)      # default path
    packed_f32 = pack_params(params, compute_dtype=jnp.float32)        # exact opt-in

    # Small batch: single grid point, whole padded batch in one tile.
    batch = 16
    x = jax.random.normal(k_x, (batch, d_in), dtype=jnp.float32)
    ref = _reference(x, params)
    out = jax.block_until_ready(fully_connected_stack(x, packed_bf16))
    assert out.shape == (batch, d_out)
    assert jnp.allclose(out, ref, atol=5e-2, rtol=5e-2)

    # Exact-f32 opt-in path (f32 operands + precision=HIGHEST).
    ref_hi = _reference(x, params, precision=jax.lax.Precision.HIGHEST)
    out_f32 = jax.block_until_ready(
        fully_connected_stack(x, packed_f32,
                              precision=jax.lax.Precision.HIGHEST))
    assert jnp.allclose(out_f32, ref_hi, atol=1e-5, rtol=1e-5)

    # Larger batch: batch padding + multiple tiles on the "parallel" grid axis.
    batch2 = 300
    x2 = jax.random.normal(k_x2, (batch2, d_in), dtype=jnp.float32)
    ref2 = _reference(x2, params)
    out2 = jax.block_until_ready(fully_connected_stack(x2, packed_bf16))
    assert out2.shape == (batch2, d_out)
    assert jnp.allclose(out2, ref2, atol=5e-2, rtol=5e-2)

    print("KERNEL_OK")
</pallas_src>

<mosaic_0001>
module attributes {stable_mosaic.version = 11 : i64} {
  func.func @_stack_kernel(%arg0: i32, %arg1: memref<16x128xf32, #tpu.memory_space<vmem>>, %arg2: memref<128x128xbf16, #tpu.memory_space<vmem>>, %arg3: memref<1x128xf32, #tpu.memory_space<vmem>>, %arg4: memref<128x128xbf16, #tpu.memory_space<vmem>>, %arg5: memref<1x128xf32, #tpu.memory_space<vmem>>, %arg6: memref<128x128xbf16, #tpu.memory_space<vmem>>, %arg7: memref<1x128xf32, #tpu.memory_space<vmem>>, %arg8: memref<16x128xf32, #tpu.memory_space<vmem>>) attributes {dimension_semantics = [#tpu.dimension_semantics<parallel>], iteration_bounds = array<i64: 1>, scalar_prefetch = 0 : i64, scratch_operands = 0 : i64, tpu.core_type = #tpu.core_type<tc>, window_params = [{transform_indices = @transform_0, window_bounds = array<i64: 16, 128>}, {pipeline_mode = #tpu.pipeline_mode<synchronous>, transform_indices = @transform_1, window_bounds = array<i64: 128, 128>}, {pipeline_mode = #tpu.pipeline_mode<synchronous>, transform_indices = @transform_2, window_bounds = array<i64: 1, 128>}, {pipeline_mode = #tpu.pipeline_mode<synchronous>, transform_indices = @transform_3, window_bounds = array<i64: 128, 128>}, {pipeline_mode = #tpu.pipeline_mode<synchronous>, transform_indices = @transform_4, window_bounds = array<i64: 1, 128>}, {pipeline_mode = #tpu.pipeline_mode<synchronous>, transform_indices = @transform_5, window_bounds = array<i64: 128, 128>}, {pipeline_mode = #tpu.pipeline_mode<synchronous>, transform_indices = @transform_6, window_bounds = array<i64: 1, 128>}, {transform_indices = @transform_7, window_bounds = array<i64: 16, 128>}]} {
    %c0 = arith.constant 0 : index
    %c0_0 = arith.constant 0 : index
    %0 = vector.load %arg1[%c0, %c0_0] : memref<16x128xf32, #tpu.memory_space<vmem>>, vector<16x128xf32>
    %1 = arith.truncf %0 : vector<16x128xf32> to vector<16x128xbf16>
    %c0_1 = arith.constant 0 : index
    %c0_2 = arith.constant 0 : index
    %2 = vector.load %arg2[%c0_1, %c0_2] : memref<128x128xbf16, #tpu.memory_space<vmem>>, vector<128x128xbf16>
    %cst = arith.constant dense<0.000000e+00> : vector<16x128xf32>
    %3 = tpu.matmul %1, %2, %cst {dimension_numbers = #tpu.dot_dimension_numbers<[1], [0], [0], [1], [0, 0, 1, 1], [], []>} : vector<16x128xbf16>, vector<128x128xbf16>, vector<16x128xf32> -> vector<16x128xf32>
    %c0_3 = arith.constant 0 : index
    %c0_4 = arith.constant 0 : index
    %4 = vector.load %arg3[%c0_3, %c0_4] : memref<1x128xf32, #tpu.memory_space<vmem>>, vector<1x128xf32>
    %5 = vector.broadcast %4 : vector<1x128xf32> to vector<16x128xf32>
    %6 = arith.addf %3, %5 : vector<16x128xf32>
    %cst_5 = arith.constant 0.000000e+00 : f32
    %7 = vector.broadcast %cst_5 : f32 to vector<16x128xf32>
    %8 = arith.maximumf %6, %7 : vector<16x128xf32>
    %9 = arith.truncf %8 : vector<16x128xf32> to vector<16x128xbf16>
    %c0_6 = arith.constant 0 : index
    %c0_7 = arith.constant 0 : index
    %10 = vector.load %arg4[%c0_6, %c0_7] : memref<128x128xbf16, #tpu.memory_space<vmem>>, vector<128x128xbf16>
    %cst_8 = arith.constant dense<0.000000e+00> : vector<16x128xf32>
    %11 = tpu.matmul %9, %10, %cst_8 {dimension_numbers = #tpu.dot_dimension_numbers<[1], [0], [0], [1], [0, 0, 1, 1], [], []>} : vector<16x128xbf16>, vector<128x128xbf16>, vector<16x128xf32> -> vector<16x128xf32>
    %c0_9 = arith.constant 0 : index
    %c0_10 = arith.constant 0 : index
    %12 = vector.load %arg5[%c0_9, %c0_10] : memref<1x128xf32, #tpu.memory_space<vmem>>, vector<1x128xf32>
    %13 = vector.broadcast %12 : vector<1x128xf32> to vector<16x128xf32>
    %14 = arith.addf %11, %13 : vector<16x128xf32>
    %cst_11 = arith.constant 0.000000e+00 : f32
    %15 = vector.broadcast %cst_11 : f32 to vector<16x128xf32>
    %16 = arith.maximumf %14, %15 : vector<16x128xf32>
    %17 = arith.truncf %16 : vector<16x128xf32> to vector<16x128xbf16>
    %c0_12 = arith.constant 0 : index
    %c0_13 = arith.constant 0 : index
    %18 = vector.load %arg6[%c0_12, %c0_13] : memref<128x128xbf16, #tpu.memory_space<vmem>>, vector<128x128xbf16>
    %cst_14 = arith.constant dense<0.000000e+00> : vector<16x128xf32>
    %19 = tpu.matmul %17, %18, %cst_14 {dimension_numbers = #tpu.dot_dimension_numbers<[1], [0], [0], [1], [0, 0, 1, 1], [], []>} : vector<16x128xbf16>, vector<128x128xbf16>, vector<16x128xf32> -> vector<16x128xf32>
    %c0_15 = arith.constant 0 : index
    %c0_16 = arith.constant 0 : index
    %20 = vector.load %arg7[%c0_15, %c0_16] : memref<1x128xf32, #tpu.memory_space<vmem>>, vector<1x128xf32>
    %21 = vector.broadcast %20 : vector<1x128xf32> to vector<16x128xf32>
    %22 = arith.addf %19, %21 : vector<16x128xf32>
    %cst_17 = arith.constant 0.000000e+00 : f32
    %23 = vector.broadcast %cst_17 : f32 to vector<16x128xf32>
    %24 = arith.maximumf %22, %23 : vector<16x128xf32>
    %25 = arith.truncf %24 : vector<16x128xf32> to vector<16x128xbf16>
    %26 = arith.extf %25 : vector<16x128xbf16> to vector<16x128xf32>
    %c0_18 = arith.constant 0 : index
    %c0_19 = arith.constant 0 : index
    %27 = vector.load %arg8[%c0_18, %c0_19] : memref<16x128xf32, #tpu.memory_space<vmem>>, vector<16x128xf32>
    tpu.vector_store %arg8[%c0_18, %c0_19], %26 {strides = array<i32>} : memref<16x128xf32, #tpu.memory_space<vmem>>, vector<16x128xf32>,
    return
  }
  func.func @transform_0(%arg0: i32) -> (i32, i32) {
    %c0_i32 = arith.constant 0 : i32
    %c0_i32_0 = arith.constant 0 : i32
    return %arg0, %c0_i32 : i32, i32
  }
  func.func @transform_1(%arg0: i32) -> (i32, i32) {
    %c0_i32 = arith.constant 0 : i32
    %c0_i32_0 = arith.constant 0 : i32
    %c0_i32_1 = arith.constant 0 : i32
    return %c0_i32, %c0_i32_0 : i32, i32
  }
  func.func @transform_2(%arg0: i32) -> (i32, i32) {
    %c0_i32 = arith.constant 0 : i32
    %c0_i32_0 = arith.constant 0 : i32
    %c0_i32_1 = arith.constant 0 : i32
    return %c0_i32, %c0_i32_0 : i32, i32
  }
  func.func @transform_3(%arg0: i32) -> (i32, i32) {
    %c0_i32 = arith.constant 0 : i32
    %c0_i32_0 = arith.constant 0 : i32
    %c0_i32_1 = arith.constant 0 : i32
    return %c0_i32, %c0_i32_0 : i32, i32
  }
  func.func @transform_4(%arg0: i32) -> (i32, i32) {
    %c0_i32 = arith.constant 0 : i32
    %c0_i32_0 = arith.constant 0 : i32
    %c0_i32_1 = arith.constant 0 : i32
    return %c0_i32, %c0_i32_0 : i32, i32
  }
  func.func @transform_5(%arg0: i32) -> (i32, i32) {
    %c0_i32 = arith.constant 0 : i32
    %c0_i32_0 = arith.constant 0 : i32
    %c0_i32_1 = arith.constant 0 : i32
    return %c0_i32, %c0_i32_0 : i32, i32
  }
  func.func @transform_6(%arg0: i32) -> (i32, i32) {
    %c0_i32 = arith.constant 0 : i32
    %c0_i32_0 = arith.constant 0 : i32
    %c0_i32_1 = arith.constant 0 : i32
    return %c0_i32, %c0_i32_0 : i32, i32
  }
  func.func @transform_7(%arg0: i32) -> (i32, i32) {
    %c0_i32 = arith.constant 0 : i32
    %c0_i32_0 = arith.constant 0 : i32
    return %arg0, %c0_i32 : i32, i32
  }
}

module attributes {stable_mosaic.version = 11 : i64} {
  func.func @_stack_kernel(%arg0: i32, %arg1: memref<16x128xf32, #tpu.memory_space<vmem>>, %arg2: memref<128x128xbf16, #tpu.memory_space<vmem>>, %arg3: memref<1x128xf32, #tpu.memory_space<vmem>>, %arg4: memref<128x128xbf16, #tpu.memory_space<vmem>>, %arg5: memref<1x128xf32, #tpu.memory_space<vmem>>, %arg6: memref<128x128xbf16, #tpu.memory_space<vmem>>, %arg7: memref<1x128xf32, #tpu.memory_space<vmem>>, %arg8: memref<16x128xf32, #tpu.memory_space<vmem>>) attributes {dimension_semantics = [#tpu.dimension_semantics<parallel>], iteration_bounds = array<i64: 1>, scalar_prefetch = 0 : i64, scratch_operands = 0 : i64, tpu.core_type = #tpu.core_type<tc>, window_params = [{transform_indices = @transform_0, window_bounds = array<i64: 16, 128>}, {pipeline_mode = #tpu.pipeline_mode<synchronous>, transform_indices = @transform_1, window_bounds = array<i64: 128, 128>}, {pipeline_mode = #tpu.pipeline_mode<synchronous>, transform_indices = @transform_2, window_bounds = array<i64: 1, 128>}, {pipeline_mode = #tpu.pipeline_mode<synchronous>, transform_indices = @transform_3, window_bounds = array<i64: 128, 128>}, {pipeline_mode = #tpu.pipeline_mode<synchronous>, transform_indices = @transform_4, window_bounds = array<i64: 1, 128>}, {pipeline_mode = #tpu.pipeline_mode<synchronous>, transform_indices = @transform_5, window_bounds = array<i64: 128, 128>}, {pipeline_mode = #tpu.pipeline_mode<synchronous>, transform_indices = @transform_6, window_bounds = array<i64: 1, 128>}, {transform_indices = @transform_7, window_bounds = array<i64: 16, 128>}]} {
    %c0 = arith.constant 0 : index
    %c0_0 = arith.constant 0 : index
    %0 = vector.load %arg1[%c0, %c0_0] : memref<16x128xf32, #tpu.memory_space<vmem>>, vector<16x128xf32>
    %1 = arith.truncf %0 : vector<16x128xf32> to vector<16x128xbf16>
    %c0_1 = arith.constant 0 : index
    %c0_2 = arith.constant 0 : index
    %2 = vector.load %arg2[%c0_1, %c0_2] : memref<128x128xbf16, #tpu.memory_space<vmem>>, vector<128x128xbf16>
    %cst = arith.constant dense<0.000000e+00> : vector<16x128xf32>
    %3 = tpu.matmul %1, %2, %cst {dimension_numbers = #tpu.dot_dimension_numbers<[1], [0], [0], [1], [0, 0, 1, 1], [], []>} : vector<16x128xbf16>, vector<128x128xbf16>, vector<16x128xf32> -> vector<16x128xf32>
    %c0_3 = arith.constant 0 : index
    %c0_4 = arith.constant 0 : index
    %4 = vector.load %arg3[%c0_3, %c0_4] : memref<1x128xf32, #tpu.memory_space<vmem>>, vector<1x128xf32>
    %5 = vector.broadcast %4 : vector<1x128xf32> to vector<16x128xf32>
    %6 = arith.addf %3, %5 : vector<16x128xf32>
    %cst_5 = arith.constant 0.000000e+00 : f32
    %7 = vector.broadcast %cst_5 : f32 to vector<16x128xf32>
    %8 = arith.maximumf %6, %7 : vector<16x128xf32>
    %9 = arith.truncf %8 : vector<16x128xf32> to vector<16x128xbf16>
    %c0_6 = arith.constant 0 : index
    %c0_7 = arith.constant 0 : index
    %10 = vector.load %arg4[%c0_6, %c0_7] : memref<128x128xbf16, #tpu.memory_space<vmem>>, vector<128x128xbf16>
    %cst_8 = arith.constant dense<0.000000e+00> : vector<16x128xf32>
    %11 = tpu.matmul %9, %10, %cst_8 {dimension_numbers = #tpu.dot_dimension_numbers<[1], [0], [0], [1], [0, 0, 1, 1], [], []>} : vector<16x128xbf16>, vector<128x128xbf16>, vector<16x128xf32> -> vector<16x128xf32>
    %c0_9 = arith.constant 0 : index
    %c0_10 = arith.constant 0 : index
    %12 = vector.load %arg5[%c0_9, %c0_10] : memref<1x128xf32, #tpu.memory_space<vmem>>, vector<1x128xf32>
    %13 = vector.broadcast %12 : vector<1x128xf32> to vector<16x128xf32>
    %14 = arith.addf %11, %13 : vector<16x128xf32>
    %cst_11 = arith.constant 0.000000e+00 : f32
    %15 = vector.broadcast %cst_11 : f32 to vector<16x128xf32>
    %16 = arith.maximumf %14, %15 : vector<16x128xf32>
    %17 = arith.truncf %16 : vector<16x128xf32> to vector<16x128xbf16>
    %c0_12 = arith.constant 0 : index
    %c0_13 = arith.constant 0 : index
    %18 = vector.load %arg6[%c0_12, %c0_13] : memref<128x128xbf16, #tpu.memory_space<vmem>>, vector<128x128xbf16>
    %cst_14 = arith.constant dense<0.000000e+00> : vector<16x128xf32>
    %19 = tpu.matmul %17, %18, %cst_14 {dimension_numbers = #tpu.dot_dimension_numbers<[1], [0], [0], [1], [0, 0, 1, 1], [], []>} : vector<16x128xbf16>, vector<128x128xbf16>, vector<16x128xf32> -> vector<16x128xf32>
    %c0_15 = arith.constant 0 : index
    %c0_16 = arith.constant 0 : index
    %20 = vector.load %arg7[%c0_15, %c0_16] : memref<1x128xf32, #tpu.memory_space<vmem>>, vector<1x128xf32>
    %21 = vector.broadcast %20 : vector<1x128xf32> to vector<16x128xf32>
    %22 = arith.addf %19, %21 : vector<16x128xf32>
    %cst_17 = arith.constant 0.000000e+00 : f32
    %23 = vector.broadcast %cst_17 : f32 to vector<16x128xf32>
    %24 = arith.maximumf %22, %23 : vector<16x128xf32>
    %25 = arith.truncf %24 : vector<16x128xf32> to vector<16x128xbf16>
    %26 = arith.extf %25 : vector<16x128xbf16> to vector<16x128xf32>
    %c0_18 = arith.constant 0 : index
    %c0_19 = arith.constant 0 : index
    %27 = vector.load %arg8[%c0_18, %c0_19] : memref<16x128xf32, #tpu.memory_space<vmem>>, vector<16x128xf32>
    tpu.vector_store %arg8[%c0_18, %c0_19], %26 {strides = array<i32>} : memref<16x128xf32, #tpu.memory_space<vmem>>, vector<16x128xf32>,
    return
  }
  func.func @transform_0(%arg0: i32) -> (i32, i32) {
    %c0_i32 = arith.constant 0 : i32
    %c0_i32_0 = arith.constant 0 : i32
    return %arg0, %c0_i32 : i32, i32
  }
  func.func @transform_1(%arg0: i32) -> (i32, i32) {
    %c0_i32 = arith.constant 0 : i32
    %c0_i32_0 = arith.constant 0 : i32
    %c0_i32_1 = arith.constant 0 : i32
    return %c0_i32, %c0_i32_0 : i32, i32
  }
  func.func @transform_2(%arg0: i32) -> (i32, i32) {
    %c0_i32 = arith.constant 0 : i32
    %c0_i32_0 = arith.constant 0 : i32
    %c0_i32_1 = arith.constant 0 : i32
    return %c0_i32, %c0_i32_0 : i32, i32
  }
  func.func @transform_3(%arg0: i32) -> (i32, i32) {
    %c0_i32 = arith.constant 0 : i32
    %c0_i32_0 = arith.constant 0 : i32
    %c0_i32_1 = arith.constant 0 : i32
    return %c0_i32, %c0_i32_0 : i32, i32
  }
  func.func @transform_4(%arg0: i32) -> (i32, i32) {
    %c0_i32 = arith.constant 0 : i32
    %c0_i32_0 = arith.constant 0 : i32
    %c0_i32_1 = arith.constant 0 : i32
    return %c0_i32, %c0_i32_0 : i32, i32
  }
  func.func @transform_5(%arg0: i32) -> (i32, i32) {
    %c0_i32 = arith.constant 0 : i32
    %c0_i32_0 = arith.constant 0 : i32
    %c0_i32_1 = arith.constant 0 : i32
    return %c0_i32, %c0_i32_0 : i32, i32
  }
  func.func @transform_6(%arg0: i32) -> (i32, i32) {
    %c0_i32 = arith.constant 0 : i32
    %c0_i32_0 = arith.constant 0 : i32
    %c0_i32_1 = arith.constant 0 : i32
    return %c0_i32, %c0_i32_0 : i32, i32
  }
  func.func @transform_7(%arg0: i32) -> (i32, i32) {
    %c0_i32 = arith.constant 0 : i32
    %c0_i32_0 = arith.constant 0 : i32
    return %arg0, %c0_i32 : i32, i32
  }
}

</mosaic_0001>

<bundles_post_ra>
// kernel: tpu_custom_call.1
= control target key start
LH: loop header
LB: loop body
LE: loop exit
PB: predicated region body
PF: predicated region fallthrough
CT: control target
= control target key end

     0   :  { %12 = vsyncpa [#allocation3], 0  ;;  %s713_s0 = inlined_call_operand.hbm [shape: f32[16,128], index: 0, kind: input, shape index: {}]   ;;  %s714_s1 = inlined_call_operand.hbm [shape: bf16[128,128], index: 1, kind: input, shape index: {}]   ;;  %s715_s2 = inlined_call_operand.vmem [shape: f32[1,128], index: 2, kind: input, shape index: {}]   ;;  %s716_s3 = inlined_call_operand.hbm [shape: bf16[128,128], index: 3, kind: input, shape index: {}]   ;;  %s717_s4 = inlined_call_operand.vmem [shape: f32[1,128], index: 4, kind: input, shape index: {}]   ;;  %s718_s5 = inlined_call_operand.hbm [shape: bf16[128,128], index: 5, kind: input, shape index: {}]   ;;  %s719_s6 = inlined_call_operand.vmem [shape: f32[1,128], index: 6, kind: input, shape index: {}]   ;;  %s720_s7 = inlined_call_operand.hbm [shape: f32[16,128], index: 7, kind: output, shape index: {}]  }
   0x1   :  { %13 = vsyncpa [#allocation6], 0 }
   0x2   :  { %14 = vsyncpa [#allocation9], 0  ;;  %s33_s26 = sshll.u32 %s714_s1, 4  ;;  %s34_s26 = int_to_ptr.hbm [resolvable:$true] %s33_s26 }
   0x3   :  { %15 = vsyncpa [#allocation4], 0  ;;  %s634_s27 = smov [#allocation5]   ;;  %s20_s8 = sshll.u32 %s713_s0, 4  ;;  %s21_s8 = int_to_ptr.hbm [resolvable:$true] %s20_s8 }
   0x4   :  { %s35_s28 = sshll.u32 %s634_s27, 4  ;;  %s635_s9 = smov 64   ;;  %s36_s28 = int_to_ptr.vmem [resolvable:$true] %s35_s28 }
   0x5   :  { %s636_s10 = smov 4   ;;  %s637_s11 = smov [#allocation2]  }
   0x6   :  { %41 = dma.hbm_to_vmem [thread:$0]  %s34_s26, 1024, %s36_s28, [#allocation6], %s635_s9, %s635_s9, %s636_s10  }
   0x7   :  { %s22_s12 = sshll.u32 %s637_s11, 4  ;;  %s638_s13 = smov 128   ;;  %s23_s12 = int_to_ptr.vmem [resolvable:$true] %s22_s12 }
   0x8   :  { %s639_s14 = smov 8   ;;  %s48_s16 = sshll.u32 %s716_s3, 4  ;;  %s49_s16 = int_to_ptr.hbm [resolvable:$true] %s48_s16 }
   0x9   :  { %28 = dma.hbm_to_vmem [thread:$0]  %s21_s8, 256, %s23_s12, [#allocation3], %s638_s13, %s638_s13, %s639_s14  }
   0xa   :  { %s640_s17 = smov [#allocation7]   ;;  %s63_s20 = sshll.u32 %s718_s5, 4  ;;  %s64_s20 = int_to_ptr.hbm [resolvable:$true] %s63_s20 }
   0xb   :  { %s50_s0 = sshll.u32 %s640_s17, 4  ;;  %s641_s21 = smov [#allocation8]   ;;  %s51_s0 = int_to_ptr.vmem [resolvable:$true] %s50_s0 }
   0xc   :  { %56 = dma.hbm_to_vmem [thread:$0]  %s49_s16, 1024, %s51_s0, [#allocation6], %s635_s9, %s635_s9, %s636_s10  }
   0xd   :  { %s65_s22 = sshll.u32 %s641_s21, 4  ;;  %s66_s22 = int_to_ptr.vmem [resolvable:$true] %s65_s22 }
   0xe   :  { %71 = dma.hbm_to_vmem [thread:$0]  %s64_s20, 1024, %s66_s22, [#allocation9], %s635_s9, %s635_s9, %s636_s10  }
   0xf   :  { %626 = dma.done.wait [#allocation3], 256  }
  0x10   :  { %627 = vsyncadd [#allocation3], 4294967040 }
  0x11   :  { %628 = dma.done.wait [#allocation6], 2048  }
  0x12   :  { %629 = vsyncadd [#allocation6], 4294965248 }
  0x13   :  { %630 = dma.done.wait [#allocation9], 1024  }
  0x14   :  { %631 = vsyncadd [#allocation9], 4294966272  ;;  %v477_v0 = vld [vmem:[#allocation5 + $0x38] sm:$0xff]  ;;  %v476_v1 = vld [vmem:[#allocation5 + $0x30] sm:$0xff]  ;;  %s359_s29 = sshll.u32 %s720_s7, 4  ;;  %s360_s29 = int_to_ptr.hbm [resolvable:$true] %s359_s29 }
  0x15   :  { %161 = vmatpush.bf16.msra.mxu0 %v477_v0  ;;  %v485_v2 = vld [vmem:[#allocation7 + $0x38] sm:$0xff]  ;;  %v484_v3 = vld [vmem:[#allocation7 + $0x30] sm:$0xff]  ;;  %v475_v4 = vld [vmem:[#allocation5 + $0x28] sm:$0xff] }
  0x16   :  { %246 = vmatpush.bf16.msra.mxu1 %v485_v2  ;;  %v483_v5 = vld [vmem:[#allocation7 + $0x28] sm:$0xff]  ;;  %v474_v6 = vld [vmem:[#allocation5 + $0x20] sm:$0xff]  ;;  %v473_v8 = vld [vmem:[#allocation5 + $0x18] sm:$0xff] }
  0x17   :  { %v482_v7 = vld [vmem:[#allocation7 + $0x20] sm:$0xff]  ;;  %v472_v9 = vld [vmem:[#allocation5 + $0x10] sm:$0xff]  ;;  %v471_v10 = vld [vmem:[#allocation5 + $0x8] sm:$0xff] }
  0x18   :  { %v470_v11 = vld [vmem:[#allocation5] sm:$0xff]  ;;  %v90_v12 = vld [vmem:[#allocation2] sm:$0xff]  ;;  %v91_v13 = vld [vmem:[#allocation2 + $0x8] sm:$0xff] }
  0x19   :  { %162 = vmatpush.bf16.msra.mxu0 %v476_v1  ;;  %v92_v14 = vpack.c.bf16 %v91_v13, %v90_v12  ;;  %v481_v15 = vld [vmem:[#allocation7 + $0x18] sm:$0xff]  ;;  %v480_v16 = vld [vmem:[#allocation7 + $0x10] sm:$0xff]  ;;  %v479_v17 = vld [vmem:[#allocation7 + $0x8] sm:$0xff] }
  0x1a   :  { %247 = vmatpush.bf16.msra.mxu1 %v484_v3  ;;  %v478_v18 = vld [vmem:[#allocation7] sm:$0xff]  ;;  %v493_v19 = vld [vmem:[#allocation8 + $0x38] sm:$0xff]  ;;  %v492_v20 = vld [vmem:[#allocation8 + $0x30] sm:$0xff] }
  0x1b   :  { %331 = vmatpush.bf16.msra.mxu2 %v493_v19  ;;  %v491_v21 = vld [vmem:[#allocation8 + $0x28] sm:$0xff]  ;;  %v490_v22 = vld [vmem:[#allocation8 + $0x20] sm:$0xff]  ;;  %v503_v24 = vld [vmem:[%s715_s2] ss:$0 sm:$0xff] }
  0x1c   :  { %v489_v31 = vld [vmem:[#allocation8 + $0x18] sm:$0xff]  ;;  %v488_v32 = vld [vmem:[#allocation8 + $0x10] sm:$0xff]  ;;  %v487_v33 = vld [vmem:[#allocation8 + $0x8] sm:$0xff] }
  0x1d   :  { %163 = vmatpush.bf16.msra.mxu0 %v475_v4  ;;  %v486_v34 = vld [vmem:[#allocation8] sm:$0xff]  ;;  %v504_v36 = vld [vmem:[%s717_s4] ss:$0 sm:$0xff]  ;;  %s642_s4 = smov [#allocation10]  }
  0x1e   :  { %248 = vmatpush.bf16.msra.mxu1 %v483_v5  ;;  %v505_v43 = vld [vmem:[%s719_s6] ss:$0 sm:$0xff]  ;;  %s357_s26 = sshll.u32 %s642_s4, 4  ;;  %s358_s26 = int_to_ptr.vmem [resolvable:$true] %s357_s26 }
  0x1f   :  { %332 = vmatpush.bf16.msra.mxu2 %v492_v20 }
  0x21   :  { %164 = vmatpush.bf16.msra.mxu0 %v474_v6 }
  0x22   :  { %249 = vmatpush.bf16.msra.mxu1 %v482_v7 }
  0x23   :  { %333 = vmatpush.bf16.msra.mxu2 %v491_v21 }
  0x25   :  { %165 = vmatpush.bf16.msra.mxu0 %v473_v8 }
  0x26   :  { %250 = vmatpush.bf16.msra.mxu1 %v481_v15 }
  0x27   :  { %334 = vmatpush.bf16.msra.mxu2 %v490_v22 }
  0x29   :  { %166 = vmatpush.bf16.msra.mxu0 %v472_v9 }
  0x2a   :  { %251 = vmatpush.bf16.msra.mxu1 %v480_v16 }
  0x2b   :  { %335 = vmatpush.bf16.msra.mxu2 %v489_v31 }
  0x2d   :  { %167 = vmatpush.bf16.msra.mxu0 %v471_v10 }
  0x2e   :  { %252 = vmatpush.bf16.msra.mxu1 %v479_v17 }
  0x2f   :  { %336 = vmatpush.bf16.msra.mxu2 %v488_v32 }
  0x31   :  { %168 = vmatpush.bf16.msra.mxu0 %v470_v11 }
  0x32   :  { %253 = vmatpush.bf16.msra.mxu1 %v478_v18 }
  0x33   :  { %337 = vmatpush.bf16.msra.mxu2 %v487_v33 }
  0x34   :  { %169 = vmatmul.bf16.vlgmr.msra.gmra.mxu0 %v92_v14 }
  0x37   :  { %338 = vmatpush.bf16.msra.mxu2 %v486_v34 }
  0xb1   :  { %v170_v23 = vpop.f32.mrf.mxu0 }
  0xb2   :  { %v171_v25 = vadd.f32 %v503_v24, %v170_v23 }
  0xb4   :  { %v175_v28 = vmax.f32 %v171_v25, 0.0 }
  0xb9   :  { %v172_v26 = vpop.f32.mrf.mxu0 }
  0xba   :  { %v173_v27 = vadd.f32 %v503_v24, %v172_v26 }
  0xbc   :  { %v176_v29 = vmax.f32 %v173_v27, 0.0 }
  0xbe   :  { %v177_v30 = vpack.c.bf16 %v176_v29, %v175_v28 }
  0xc0   :  { %254 = vmatmul.bf16.vlgmr.msra.gmra.mxu1 %v177_v30 }
 0x13d   :  { %v255_v35 = vpop.f32.mrf.mxu1 }
 0x13e   :  { %v256_v37 = vadd.f32 %v504_v36, %v255_v35 }
 0x140   :  { %v260_v40 = vmax.f32 %v256_v37, 0.0 }
 0x145   :  { %v257_v38 = vpop.f32.mrf.mxu1 }
 0x146   :  { %v258_v39 = vadd.f32 %v504_v36, %v257_v38 }
 0x148   :  { %v261_v41 = vmax.f32 %v258_v39, 0.0 }
 0x14a   :  { %v262_v42 = vpack.c.bf16 %v261_v41, %v260_v40 }
 0x14c   :  { %339 = vmatmul.bf16.vlgmr.msra.gmra.mxu2 %v262_v42 }
 0x1cf   :  { %v340_v44 = vpop.f32.mrf.mxu2 }
 0x1d0   :  { %v341_v45 = vadd.f32 %v505_v43, %v340_v44 }
 0x1d2   :  { %v345_v46 = vmax.f32 %v341_v45, 0.0 }
 0x1d4   :  { %v347_v47 = vpack.c.bf16 %v345_v46, %v345_v46 }
 0x1d6   :  { %v349_v48 = vunpack.c.l.bf16 %v347_v47 }
 0x1d7   :  { %v342_v49 = vpop.f32.mrf.mxu2 }
 0x1d8   :  { %351 = vst [vmem:[#allocation10] sm:$0xff] %v349_v48  ;;  %v343_v50 = vadd.f32 %v505_v43, %v342_v49 }
 0x1da   :  { %v346_v51 = vmax.f32 %v343_v50, 0.0 }
 0x1dc   :  { %v348_v52 = vpack.c.bf16 %v346_v51, %v346_v51 }
 0x1de   :  { %v350_v53 = vunpack.c.l.bf16 %v348_v52 }
 0x1e0   :  { %352 = vst [vmem:[#allocation10 + $0x8] sm:$0xff] %v350_v53 }
 0x1e1   :  { %365 = dma.vmem_to_hbm [thread:$0]  %s358_s26, 256, %s360_s29, [#allocation4], %s638_s13, %s638_s13, %s639_s14  }
 0x1e2   :  { %632 = dma.done.wait [#allocation4], 256  }
 0x1e3   :  { %633 = vsyncadd [#allocation4], 4294967040 }
 0x1e4   :  { %370 = vsyncpa [#allocation3], 1 }
 0x1e5   :  { %371 = vsyncpa [#allocation6], 1 }
 0x1e6   :  { %372 = vsyncpa [#allocation9], 1 }
 0x1e7   :  { %373 = vsyncpa [#allocation4], 1 }

// kernel: tpu_custom_call.1
= control target key start
LH: loop header
LB: loop body
LE: loop exit
PB: predicated region body
PF: predicated region fallthrough
CT: control target
= control target key end

     0   :  { %12 = vsyncpa [#allocation3], 0  ;;  %s713_s0 = inlined_call_operand.hbm [shape: f32[16,128], index: 0, kind: input, shape index: {}]   ;;  %s714_s1 = inlined_call_operand.hbm [shape: bf16[128,128], index: 1, kind: input, shape index: {}]   ;;  %s715_s2 = inlined_call_operand.vmem [shape: f32[1,128], index: 2, kind: input, shape index: {}]   ;;  %s716_s3 = inlined_call_operand.hbm [shape: bf16[128,128], index: 3, kind: input, shape index: {}]   ;;  %s717_s4 = inlined_call_operand.vmem [shape: f32[1,128], index: 4, kind: input, shape index: {}]   ;;  %s718_s5 = inlined_call_operand.hbm [shape: bf16[128,128], index: 5, kind: input, shape index: {}]   ;;  %s719_s6 = inlined_call_operand.vmem [shape: f32[1,128], index: 6, kind: input, shape index: {}]   ;;  %s720_s7 = inlined_call_operand.hbm [shape: f32[16,128], index: 7, kind: output, shape index: {}]  }
   0x1   :  { %13 = vsyncpa [#allocation6], 0 }
   0x2   :  { %14 = vsyncpa [#allocation9], 0  ;;  %s33_s26 = sshll.u32 %s714_s1, 4  ;;  %s34_s26 = int_to_ptr.hbm [resolvable:$true] %s33_s26 }
   0x3   :  { %15 = vsyncpa [#allocation4], 0  ;;  %s634_s27 = smov [#allocation5]   ;;  %s20_s8 = sshll.u32 %s713_s0, 4  ;;  %s21_s8 = int_to_ptr.hbm [resolvable:$true] %s20_s8 }
   0x4   :  { %s35_s28 = sshll.u32 %s634_s27, 4  ;;  %s635_s9 = smov 64   ;;  %s36_s28 = int_to_ptr.vmem [resolvable:$true] %s35_s28 }
   0x5   :  { %s636_s10 = smov 4   ;;  %s637_s11 = smov [#allocation2]  }
   0x6   :  { %41 = dma.hbm_to_vmem [thread:$0]  %s34_s26, 1024, %s36_s28, [#allocation6], %s635_s9, %s635_s9, %s636_s10  }
   0x7   :  { %s22_s12 = sshll.u32 %s637_s11, 4  ;;  %s638_s13 = smov 128   ;;  %s23_s12 = int_to_ptr.vmem [resolvable:$true] %s22_s12 }
   0x8   :  { %s639_s14 = smov 8   ;;  %s48_s16 = sshll.u32 %s716_s3, 4  ;;  %s49_s16 = int_to_ptr.hbm [resolvable:$true] %s48_s16 }
   0x9   :  { %28 = dma.hbm_to_vmem [thread:$0]  %s21_s8, 256, %s23_s12, [#allocation3], %s638_s13, %s638_s13, %s639_s14  }
   0xa   :  { %s640_s17 = smov [#allocation7]   ;;  %s63_s20 = sshll.u32 %s718_s5, 4  ;;  %s64_s20 = int_to_ptr.hbm [resolvable:$true] %s63_s20 }
   0xb   :  { %s50_s0 = sshll.u32 %s640_s17, 4  ;;  %s641_s21 = smov [#allocation8]   ;;  %s51_s0 = int_to_ptr.vmem [resolvable:$true] %s50_s0 }
   0xc   :  { %56 = dma.hbm_to_vmem [thread:$0]  %s49_s16, 1024, %s51_s0, [#allocation6], %s635_s9, %s635_s9, %s636_s10  }
   0xd   :  { %s65_s22 = sshll.u32 %s641_s21, 4  ;;  %s66_s22 = int_to_ptr.vmem [resolvable:$true] %s65_s22 }
   0xe   :  { %71 = dma.hbm_to_vmem [thread:$0]  %s64_s20, 1024, %s66_s22, [#allocation9], %s635_s9, %s635_s9, %s636_s10  }
   0xf   :  { %626 = dma.done.wait [#allocation3], 256  }
  0x10   :  { %627 = vsyncadd [#allocation3], 4294967040 }
  0x11   :  { %628 = dma.done.wait [#allocation6], 2048  }
  0x12   :  { %629 = vsyncadd [#allocation6], 4294965248 }
  0x13   :  { %630 = dma.done.wait [#allocation9], 1024  }
  0x14   :  { %631 = vsyncadd [#allocation9], 4294966272  ;;  %v477_v0 = vld [vmem:[#allocation5 + $0x38] sm:$0xff]  ;;  %v476_v1 = vld [vmem:[#allocation5 + $0x30] sm:$0xff]  ;;  %s359_s29 = sshll.u32 %s720_s7, 4  ;;  %s360_s29 = int_to_ptr.hbm [resolvable:$true] %s359_s29 }
  0x15   :  { %161 = vmatpush.bf16.msra.mxu0 %v477_v0  ;;  %v485_v2 = vld [vmem:[#allocation7 + $0x38] sm:$0xff]  ;;  %v484_v3 = vld [vmem:[#allocation7 + $0x30] sm:$0xff]  ;;  %v475_v4 = vld [vmem:[#allocation5 + $0x28] sm:$0xff] }
  0x16   :  { %246 = vmatpush.bf16.msra.mxu1 %v485_v2  ;;  %v483_v5 = vld [vmem:[#allocation7 + $0x28] sm:$0xff]  ;;  %v474_v6 = vld [vmem:[#allocation5 + $0x20] sm:$0xff]  ;;  %v473_v8 = vld [vmem:[#allocation5 + $0x18] sm:$0xff] }
  0x17   :  { %v482_v7 = vld [vmem:[#allocation7 + $0x20] sm:$0xff]  ;;  %v472_v9 = vld [vmem:[#allocation5 + $0x10] sm:$0xff]  ;;  %v471_v10 = vld [vmem:[#allocation5 + $0x8] sm:$0xff] }
  0x18   :  { %v470_v11 = vld [vmem:[#allocation5] sm:$0xff]  ;;  %v90_v12 = vld [vmem:[#allocation2] sm:$0xff]  ;;  %v91_v13 = vld [vmem:[#allocation2 + $0x8] sm:$0xff] }
  0x19   :  { %162 = vmatpush.bf16.msra.mxu0 %v476_v1  ;;  %v92_v14 = vpack.c.bf16 %v91_v13, %v90_v12  ;;  %v481_v15 = vld [vmem:[#allocation7 + $0x18] sm:$0xff]  ;;  %v480_v16 = vld [vmem:[#allocation7 + $0x10] sm:$0xff]  ;;  %v479_v17 = vld [vmem:[#allocation7 + $0x8] sm:$0xff] }
  0x1a   :  { %247 = vmatpush.bf16.msra.mxu1 %v484_v3  ;;  %v478_v18 = vld [vmem:[#allocation7] sm:$0xff]  ;;  %v493_v19 = vld [vmem:[#allocation8 + $0x38] sm:$0xff]  ;;  %v492_v20 = vld [vmem:[#allocation8 + $0x30] sm:$0xff] }
  0x1b   :  { %331 = vmatpush.bf16.msra.mxu2 %v493_v19  ;;  %v491_v21 = vld [vmem:[#allocation8 + $0x28] sm:$0xff]  ;;  %v490_v22 = vld [vmem:[#allocation8 + $0x20] sm:$0xff]  ;;  %v503_v24 = vld [vmem:[%s715_s2] ss:$0 sm:$0xff] }
  0x1c   :  { %v489_v31 = vld [vmem:[#allocation8 + $0x18] sm:$0xff]  ;;  %v488_v32 = vld [vmem:[#allocation8 + $0x10] sm:$0xff]  ;;  %v487_v33 = vld [vmem:[#allocation8 + $0x8] sm:$0xff] }
  0x1d   :  { %163 = vmatpush.bf16.msra.mxu0 %v475_v4  ;;  %v486_v34 = vld [vmem:[#allocation8] sm:$0xff]  ;;  %v504_v36 = vld [vmem:[%s717_s4] ss:$0 sm:$0xff]  ;;  %s642_s4 = smov [#allocation10]  }
  0x1e   :  { %248 = vmatpush.bf16.msra.mxu1 %v483_v5  ;;  %v505_v43 = vld [vmem:[%s719_s6] ss:$0 sm:$0xff]  ;;  %s357_s26 = sshll.u32 %s642_s4, 4  ;;  %s358_s26 = int_to_ptr.vmem [resolvable:$true] %s357_s26 }
  0x1f   :  { %332 = vmatpush.bf16.msra.mxu2 %v492_v20 }
  0x21   :  { %164 = vmatpush.bf16.msra.mxu0 %v474_v6 }
  0x22   :  { %249 = vmatpush.bf16.msra.mxu1 %v482_v7 }
  0x23   :  { %333 = vmatpush.bf16.msra.mxu2 %v491_v21 }
  0x25   :  { %165 = vmatpush.bf16.msra.mxu0 %v473_v8 }
  0x26   :  { %250 = vmatpush.bf16.msra.mxu1 %v481_v15 }
  0x27   :  { %334 = vmatpush.bf16.msra.mxu2 %v490_v22 }
  0x29   :  { %166 = vmatpush.bf16.msra.mxu0 %v472_v9 }
  0x2a   :  { %251 = vmatpush.bf16.msra.mxu1 %v480_v16 }
  0x2b   :  { %335 = vmatpush.bf16.msra.mxu2 %v489_v31 }
  0x2d   :  { %167 = vmatpush.bf16.msra.mxu0 %v471_v10 }
  0x2e   :  { %252 = vmatpush.bf16.msra.mxu1 %v479_v17 }
  0x2f   :  { %336 = vmatpush.bf16.msra.mxu2 %v488_v32 }
  0x31   :  { %168 = vmatpush.bf16.msra.mxu0 %v470_v11 }
  0x32   :  { %253 = vmatpush.bf16.msra.mxu1 %v478_v18 }
  0x33   :  { %337 = vmatpush.bf16.msra.mxu2 %v487_v33 }
  0x34   :  { %169 = vmatmul.bf16.vlgmr.msra.gmra.mxu0 %v92_v14 }
  0x37   :  { %338 = vmatpush.bf16.msra.mxu2 %v486_v34 }
  0xb1   :  { %v170_v23 = vpop.f32.mrf.mxu0 }
  0xb2   :  { %v171_v25 = vadd.f32 %v503_v24, %v170_v23 }
  0xb4   :  { %v175_v28 = vmax.f32 %v171_v25, 0.0 }
  0xb9   :  { %v172_v26 = vpop.f32.mrf.mxu0 }
  0xba   :  { %v173_v27 = vadd.f32 %v503_v24, %v172_v26 }
  0xbc   :  { %v176_v29 = vmax.f32 %v173_v27, 0.0 }
  0xbe   :  { %v177_v30 = vpack.c.bf16 %v176_v29, %v175_v28 }
  0xc0   :  { %254 = vmatmul.bf16.vlgmr.msra.gmra.mxu1 %v177_v30 }
 0x13d   :  { %v255_v35 = vpop.f32.mrf.mxu1 }
 0x13e   :  { %v256_v37 = vadd.f32 %v504_v36, %v255_v35 }
 0x140   :  { %v260_v40 = vmax.f32 %v256_v37, 0.0 }
 0x145   :  { %v257_v38 = vpop.f32.mrf.mxu1 }
 0x146   :  { %v258_v39 = vadd.f32 %v504_v36, %v257_v38 }
 0x148   :  { %v261_v41 = vmax.f32 %v258_v39, 0.0 }
 0x14a   :  { %v262_v42 = vpack.c.bf16 %v261_v41, %v260_v40 }
 0x14c   :  { %339 = vmatmul.bf16.vlgmr.msra.gmra.mxu2 %v262_v42 }
 0x1cf   :  { %v340_v44 = vpop.f32.mrf.mxu2 }
 0x1d0   :  { %v341_v45 = vadd.f32 %v505_v43, %v340_v44 }
 0x1d2   :  { %v345_v46 = vmax.f32 %v341_v45, 0.0 }
 0x1d4   :  { %v347_v47 = vpack.c.bf16 %v345_v46, %v345_v46 }
 0x1d6   :  { %v349_v48 = vunpack.c.l.bf16 %v347_v47 }
 0x1d7   :  { %v342_v49 = vpop.f32.mrf.mxu2 }
 0x1d8   :  { %351 = vst [vmem:[#allocation10] sm:$0xff] %v349_v48  ;;  %v343_v50 = vadd.f32 %v505_v43, %v342_v49 }
 0x1da   :  { %v346_v51 = vmax.f32 %v343_v50, 0.0 }
 0x1dc   :  { %v348_v52 = vpack.c.bf16 %v346_v51, %v346_v51 }
 0x1de   :  { %v350_v53 = vunpack.c.l.bf16 %v348_v52 }
 0x1e0   :  { %352 = vst [vmem:[#allocation10 + $0x8] sm:$0xff] %v350_v53 }
 0x1e1   :  { %365 = dma.vmem_to_hbm [thread:$0]  %s358_s26, 256, %s360_s29, [#allocation4], %s638_s13, %s638_s13, %s639_s14  }
 0x1e2   :  { %632 = dma.done.wait [#allocation4], 256  }
 0x1e3   :  { %633 = vsyncadd [#allocation4], 4294967040 }
 0x1e4   :  { %370 = vsyncpa [#allocation3], 1 }
 0x1e5   :  { %371 = vsyncpa [#allocation6], 1 }
 0x1e6   :  { %372 = vsyncpa [#allocation9], 1 }
 0x1e7   :  { %373 = vsyncpa [#allocation4], 1 }

</bundles_post_ra>
